<compile_context>
chip_gen: v7x
topology: tpu7x:2x2x1
jax: 0.10.0
libtpu: 0.0.40
codegen_flags: <defaults>
</compile_context>

<pallas_src>
import jax
import jax.numpy as jnp
from jax.experimental import pallas as pl
from jax.experimental.pallas import tpu as pltpu


def _prefix_encoder_kernel(cw_ref, pref_ref, g1_ref, g2_ref,
                           wnew_ref, bnew_ref, out_ref):
    """One feature tile of the prefix-encoder blend.

    cw_ref   : (B, W, H)   raw context_word (full H, all batches)
    pref_ref : (B, P, ts)  prefix_tokens1 feature tile
    g1_ref   : (B, ts)     precomputed gate1 tile (position-invariant)
    g2_ref   : (B, ts)     precomputed gate2 tile
    wnew_ref : (H, ts)     new_layer weight tile
    bnew_ref : (1, ts)     new_layer bias tile
    out_ref  : (B, L, ts)  output tile, L = W + P
    """
    B, W, H = cw_ref.shape
    P = pref_ref.shape[1]
    ts = out_ref.shape[2]
    L = W + P

    # context_word = sigmoid(new_layer(context_word)) as a single big-M matmul.
    # The (B, W, H) -> (B*W, H) merge is layout-free when W % 8 == 0 (sublane
    # merge only); the MXU sees M = B*W instead of B separate M = W calls.
    cw_flat = cw_ref[...].reshape(B * W, H)
    cw = jax.nn.sigmoid(
        jnp.dot(cw_flat, wnew_ref[...], preferred_element_type=jnp.float32)
        + bnew_ref[...]).reshape(B, W, ts)

    pref = pref_ref[...]                       # (B, P, ts)
    g1 = g1_ref[...][:, None, :]               # (B, 1, ts) — broadcast over rows
    g2 = g2_ref[...][:, None, :]
    one_m_g1 = 1.0 - g1
    one_m_g2 = 1.0 - g2

    # Segmented stores instead of concatenations.  Row r of the logical cats:
    #   padded_a[r]      = cw[r]   if r < W else pref[r - W]
    #   padded_b[r]      = pref[r] if r < P else cw[r - P]
    #   padded_prefix[r] = pref[r] if r < P else 0
    # Split points {0, W, P, L} keep each case constant within a segment
    # (handles W != P with up to three segments).
    def _pa(s, e):
        return cw[:, s:e, :] if e <= W else pref[:, s - W:e - W, :]

    def _pb(s, e):
        return pref[:, s:e, :] if e <= P else cw[:, s - P:e - P, :]

    bounds = sorted({0, W, P, L})
    for s, e in zip(bounds[:-1], bounds[1:]):
        blend = g2 * _pa(s, e) + one_m_g2 * _pb(s, e)
        if e <= P:
            # padded_prefix rows are prefix embeddings here.
            seg = g1 * pref[:, s:e, :] + one_m_g1 * blend
        else:
            # padded_prefix rows are zero here -> drop the gate1 * 0 term.
            # (torch builds this pad as .long() zeros; zeros are zeros, keep f32)
            seg = one_m_g1 * blend
        out_ref[:, s:e, :] = seg.astype(out_ref.dtype)


def _pick_ts(size):
    """Largest lane-dense tile of {512,256,128} dividing size, preferring grid>=2."""
    for cand in (512, 256, 128):
        if size % cand == 0 and size // cand >= 2:
            return cand
    for cand in (512, 256, 128):
        if size % cand == 0:
            return cand
    return size


def prefix_encoder_forward(context_word, pooled_output1, prefix, params, *, ts=None):
    """context_word: (B, W, H) f32, pooled_output1: (B, H) f32, prefix: (B, P) i32."""
    emb1 = params["embedding1"]                       # (pre_seq_len, size)
    size = emb1.shape[1]
    B, W, H = context_word.shape
    P = prefix.shape[1]
    L = W + P
    if ts is None:
        ts = _pick_ts(size)
    assert size % ts == 0

    # Glue kept in plain JAX:
    #  - embedding gather (data-dependent row gather),
    #  - gate path: position-invariant, one batched (B,H)@(H,size) matmul; this
    #    keeps the (H, size) gate weight out of the per-tile HBM stream.
    prefix_tokens1 = jnp.take(emb1, prefix, axis=0)                    # (B, P, size)
    g = jax.nn.sigmoid(pooled_output1 @ params["w_gate1"]
                       + params["b_gate1"][0])                         # (B, size)
    gate1 = jax.nn.sigmoid(params["weight1"] * g)                      # (B, size)
    gate2 = jax.nn.sigmoid(params["weight2"] * gate1)                  # (B, size)

    # Advisory VMEM budget: double-buffered tiles with headroom, capped well
    # under v7x's 64 MiB physical VMEM (v5e/v6e have 128 MiB).
    est = 2 * 4 * (B * W * H + B * P * ts + 2 * B * ts + H * ts + ts + B * L * ts)
    vmem_limit = int(min(max(3 * est, 32 << 20), 48 << 20))

    out = pl.pallas_call(
        _prefix_encoder_kernel,
        out_shape=jax.ShapeDtypeStruct((B, L, size), jnp.float32),
        grid_spec=pltpu.PrefetchScalarGridSpec(
            num_scalar_prefetch=0,
            grid=(size // ts,),
            in_specs=[
                pl.BlockSpec((B, W, H), lambda j: (0, 0, 0)),   # context_word (whole; resident)
                pl.BlockSpec((B, P, ts), lambda j: (0, 0, j)),  # prefix emb tile
                pl.BlockSpec((B, ts), lambda j: (0, j)),        # gate1 tile
                pl.BlockSpec((B, ts), lambda j: (0, j)),        # gate2 tile
                pl.BlockSpec((H, ts), lambda j: (0, j)),        # W_new tile
                pl.BlockSpec((1, ts), lambda j: (0, j)),        # b_new tile
            ],
            out_specs=pl.BlockSpec((B, L, ts), lambda j: (0, 0, j)),
        ),
        compiler_params=pltpu.CompilerParams(
            dimension_semantics=("parallel",),
            vmem_limit_bytes=vmem_limit),
    )(context_word, prefix_tokens1, gate1, gate2,
      params["w_new"], params["b_new"])
    return out, L


def prefix_encoder_reference(context_word, pooled_output1, prefix, params):
    """Pure-JAX reference mirroring the torch forward (prefix_projection=False)."""
    emb1 = params["embedding1"]
    pref = jnp.take(emb1, prefix, axis=0)                       # (B, P, size)
    cw = jax.nn.sigmoid(context_word @ params["w_new"] + params["b_new"][0])
    B, W, size = cw.shape
    P = pref.shape[1]
    L = W + P
    padded_a = jnp.concatenate([cw, pref], axis=1)
    padded_b = jnp.concatenate([pref, cw], axis=1)
    pooled_rep = jnp.repeat(pooled_output1[:, None, :], L, axis=1)
    gate1 = jax.nn.sigmoid(pooled_rep @ params["w_gate1"] + params["b_gate1"][0])
    gate1 = jax.nn.sigmoid(params["weight1"] * gate1)
    gate2 = jax.nn.sigmoid(params["weight2"] * gate1)
    padded_prefix = jnp.concatenate(
        [pref, jnp.zeros((B, L - P, size), jnp.float32)], axis=1)
    out = gate1 * padded_prefix + (1 - gate1) * (
        gate2 * padded_a + (1 - gate2) * padded_b)
    return out, L


def make_params(key, *, pre_seq_len, hidden, num_layers):
    size = num_layers * 2 * hidden
    ks = jax.random.split(key, 8)
    scale = 0.05
    return {
        "embedding1": scale * jax.random.normal(ks[0], (pre_seq_len, size), jnp.float32),
        "w_new":      scale * jax.random.normal(ks[1], (hidden, size), jnp.float32),
        "b_new":      scale * jax.random.normal(ks[2], (1, size), jnp.float32),
        "w_gate1":    scale * jax.random.normal(ks[3], (hidden, size), jnp.float32),
        "b_gate1":    scale * jax.random.normal(ks[4], (1, size), jnp.float32),
        "weight1":    scale * jax.random.normal(ks[5], (1, size), jnp.float32),
        "weight2":    scale * jax.random.normal(ks[6], (1, size), jnp.float32),
    }
# TODO(synk): the prefix_projection=True branch of the torch module calls
# torch.nn.Sigmoid(tensor) and mixes mismatched embedding dims, so it cannot
# execute in torch; only the prefix_projection=False path is implemented here.


if __name__ == "__main__":
    # Small config: batch=2, hidden=32, layers=2 -> size=128; with hidden=32 the
    # grid is 1 tile, so use hidden=32*2=64 features? Keep spec-small: hidden=32
    # gives size=128 (1 tile); use layers=2, hidden=32 but widen via layers to
    # exercise tiling: layers=2, hidden=64 -> size=256 -> 2 feature tiles.
    B, H, NL, P, W = 2, 64, 2, 8, 8
    key = jax.random.PRNGKey(0)
    kp, kc, kq, ki = jax.random.split(key, 4)

    params = make_params(kp, pre_seq_len=P, hidden=H, num_layers=NL)
    context_word = jax.random.normal(kc, (B, W, H), jnp.float32)
    pooled_output1 = jax.random.normal(kq, (B, H), jnp.float32)
    prefix = jax.random.randint(ki, (B, P), 0, P, dtype=jnp.int32)

    out, seq_size = prefix_encoder_forward(context_word, pooled_output1, prefix, params)
    out = jax.block_until_ready(out)

    ref, ref_seq = prefix_encoder_reference(context_word, pooled_output1, prefix, params)
    assert seq_size == ref_seq
    assert out.shape == (B, W + P, NL * 2 * H)
    assert jnp.allclose(out, ref, atol=1e-5, rtol=1e-5)
    print("KERNEL_OK")
</pallas_src>

<mosaic_0001>
module attributes {stable_mosaic.version = 11 : i64} {
  func.func @_prefix_encoder_kernel(%arg0: i32, %arg1: memref<2x8x64xf32, #tpu.memory_space<vmem>>, %arg2: memref<2x8x128xf32, #tpu.memory_space<vmem>>, %arg3: memref<2x128xf32, #tpu.memory_space<vmem>>, %arg4: memref<2x128xf32, #tpu.memory_space<vmem>>, %arg5: memref<64x128xf32, #tpu.memory_space<vmem>>, %arg6: memref<1x128xf32, #tpu.memory_space<vmem>>, %arg7: memref<2x16x128xf32, #tpu.memory_space<vmem>>) attributes {dimension_semantics = [#tpu.dimension_semantics<parallel>], iteration_bounds = array<i64: 2>, scalar_prefetch = 0 : i64, scratch_operands = 0 : i64, tpu.core_type = #tpu.core_type<tc>, window_params = [{pipeline_mode = #tpu.pipeline_mode<synchronous>, transform_indices = @transform_0, window_bounds = array<i64: 2, 8, 64>}, {transform_indices = @transform_1, window_bounds = array<i64: 2, 8, 128>}, {transform_indices = @transform_2, window_bounds = array<i64: 2, 128>}, {transform_indices = @transform_3, window_bounds = array<i64: 2, 128>}, {transform_indices = @transform_4, window_bounds = array<i64: 64, 128>}, {transform_indices = @transform_5, window_bounds = array<i64: 1, 128>}, {transform_indices = @transform_6, window_bounds = array<i64: 2, 16, 128>}]} {
    %c0 = arith.constant 0 : index
    %c0_0 = arith.constant 0 : index
    %c0_1 = arith.constant 0 : index
    %0 = vector.load %arg1[%c0, %c0_0, %c0_1] : memref<2x8x64xf32, #tpu.memory_space<vmem>>, vector<2x8x64xf32>
    %1 = vector.shape_cast %0 : vector<2x8x64xf32> to vector<16x64xf32>
    %c0_2 = arith.constant 0 : index
    %c0_3 = arith.constant 0 : index
    %2 = vector.load %arg5[%c0_2, %c0_3] : memref<64x128xf32, #tpu.memory_space<vmem>>, vector<64x128xf32>
    %cst = arith.constant dense<0.000000e+00> : vector<16x128xf32>
    %3 = tpu.matmul %1, %2, %cst {dimension_numbers = #tpu.dot_dimension_numbers<[1], [0], [0], [1], [0, 0, 1, 1], [], []>} : vector<16x64xf32>, vector<64x128xf32>, vector<16x128xf32> -> vector<16x128xf32>
    %c0_4 = arith.constant 0 : index
    %c0_5 = arith.constant 0 : index
    %4 = vector.load %arg6[%c0_4, %c0_5] : memref<1x128xf32, #tpu.memory_space<vmem>>, vector<1x128xf32>
    %5 = vector.broadcast %4 : vector<1x128xf32> to vector<16x128xf32>
    %6 = arith.addf %3, %5 : vector<16x128xf32>
    %7 = arith.negf %6 : vector<16x128xf32>
    %8 = math.exp %7 : vector<16x128xf32>
    %cst_6 = arith.constant 1.000000e+00 : f32
    %9 = vector.broadcast %cst_6 : f32 to vector<16x128xf32>
    %10 = arith.addf %9, %8 : vector<16x128xf32>
    %11 = arith.divf %9, %10 : vector<16x128xf32>
    %12 = vector.shape_cast %11 : vector<16x128xf32> to vector<2x8x128xf32>
    %c0_7 = arith.constant 0 : index
    %c0_8 = arith.constant 0 : index
    %c0_9 = arith.constant 0 : index
    %13 = vector.load %arg2[%c0_7, %c0_8, %c0_9] : memref<2x8x128xf32, #tpu.memory_space<vmem>>, vector<2x8x128xf32>
    %c0_10 = arith.constant 0 : index
    %c0_11 = arith.constant 0 : index
    %14 = vector.load %arg3[%c0_10, %c0_11] : memref<2x128xf32, #tpu.memory_space<vmem>>, vector<2x128xf32>
    %15 = vector.shape_cast %14 : vector<2x128xf32> to vector<2x1x128xf32>
    %c0_12 = arith.constant 0 : index
    %c0_13 = arith.constant 0 : index
    %16 = vector.load %arg4[%c0_12, %c0_13] : memref<2x128xf32, #tpu.memory_space<vmem>>, vector<2x128xf32>
    %17 = vector.shape_cast %16 : vector<2x128xf32> to vector<2x1x128xf32>
    %cst_14 = arith.constant 1.000000e+00 : f32
    %18 = vector.broadcast %cst_14 : f32 to vector<2x1x128xf32>
    %19 = arith.subf %18, %15 : vector<2x1x128xf32>
    %cst_15 = arith.constant 1.000000e+00 : f32
    %20 = vector.broadcast %cst_15 : f32 to vector<2x1x128xf32>
    %21 = arith.subf %20, %17 : vector<2x1x128xf32>
    %22 = vector.broadcast %17 : vector<2x1x128xf32> to vector<2x8x128xf32>
    %23 = arith.mulf %22, %12 : vector<2x8x128xf32>
    %24 = vector.broadcast %21 : vector<2x1x128xf32> to vector<2x8x128xf32>
    %25 = arith.mulf %24, %13 : vector<2x8x128xf32>
    %26 = arith.addf %23, %25 : vector<2x8x128xf32>
    %27 = vector.broadcast %15 : vector<2x1x128xf32> to vector<2x8x128xf32>
    %28 = arith.mulf %27, %13 : vector<2x8x128xf32>
    %29 = vector.broadcast %19 : vector<2x1x128xf32> to vector<2x8x128xf32>
    %30 = arith.mulf %29, %26 : vector<2x8x128xf32>
    %31 = arith.addf %28, %30 : vector<2x8x128xf32>
    %c0_16 = arith.constant 0 : index
    %c0_17 = arith.constant 0 : index
    %c0_18 = arith.constant 0 : index
    %32 = vector.load %arg7[%c0_16, %c0_17, %c0_18] : memref<2x16x128xf32, #tpu.memory_space<vmem>>, vector<2x8x128xf32>
    tpu.vector_store %arg7[%c0_16, %c0_17, %c0_18], %31 {strides = array<i32>} : memref<2x16x128xf32, #tpu.memory_space<vmem>>, vector<2x8x128xf32>,
    %33 = vector.broadcast %17 : vector<2x1x128xf32> to vector<2x8x128xf32>
    %34 = arith.mulf %33, %13 : vector<2x8x128xf32>
    %35 = vector.broadcast %21 : vector<2x1x128xf32> to vector<2x8x128xf32>
    %36 = arith.mulf %35, %12 : vector<2x8x128xf32>
    %37 = arith.addf %34, %36 : vector<2x8x128xf32>
    %38 = vector.broadcast %19 : vector<2x1x128xf32> to vector<2x8x128xf32>
    %39 = arith.mulf %38, %37 : vector<2x8x128xf32>
    %c0_19 = arith.constant 0 : index
    %c8 = arith.constant 8 : index
    %c0_20 = arith.constant 0 : index
    %40 = vector.load %arg7[%c0_19, %c8, %c0_20] : memref<2x16x128xf32, #tpu.memory_space<vmem>>, vector<2x8x128xf32>
    tpu.vector_store %arg7[%c0_19, %c8, %c0_20], %39 {strides = array<i32>} : memref<2x16x128xf32, #tpu.memory_space<vmem>>, vector<2x8x128xf32>,
    return
  }
  func.func @transform_0(%arg0: i32) -> (i32, i32, i32) {
    %c0_i32 = arith.constant 0 : i32
    %c0_i32_0 = arith.constant 0 : i32
    %c0_i32_1 = arith.constant 0 : i32
    %c0_i32_2 = arith.constant 0 : i32
    return %c0_i32, %c0_i32_0, %c0_i32_1 : i32, i32, i32
  }
  func.func @transform_1(%arg0: i32) -> (i32, i32, i32) {
    %c0_i32 = arith.constant 0 : i32
    %c0_i32_0 = arith.constant 0 : i32
    %c0_i32_1 = arith.constant 0 : i32
    return %c0_i32, %c0_i32_0, %arg0 : i32, i32, i32
  }
  func.func @transform_2(%arg0: i32) -> (i32, i32) {
    %c0_i32 = arith.constant 0 : i32
    %c0_i32_0 = arith.constant 0 : i32
    return %c0_i32, %arg0 : i32, i32
  }
  func.func @transform_3(%arg0: i32) -> (i32, i32) {
    %c0_i32 = arith.constant 0 : i32
    %c0_i32_0 = arith.constant 0 : i32
    return %c0_i32, %arg0 : i32, i32
  }
  func.func @transform_4(%arg0: i32) -> (i32, i32) {
    %c0_i32 = arith.constant 0 : i32
    %c0_i32_0 = arith.constant 0 : i32
    return %c0_i32, %arg0 : i32, i32
  }
  func.func @transform_5(%arg0: i32) -> (i32, i32) {
    %c0_i32 = arith.constant 0 : i32
    %c0_i32_0 = arith.constant 0 : i32
    return %c0_i32, %arg0 : i32, i32
  }
  func.func @transform_6(%arg0: i32) -> (i32, i32, i32) {
    %c0_i32 = arith.constant 0 : i32
    %c0_i32_0 = arith.constant 0 : i32
    %c0_i32_1 = arith.constant 0 : i32
    return %c0_i32, %c0_i32_0, %arg0 : i32, i32, i32
  }
}

</mosaic_0001>

<bundles_post_ra>
// kernel: tpu_custom_call.1
= control target key start
LH: loop header
LB: loop body
LE: loop exit
PB: predicated region body
PF: predicated region fallthrough
CT: control target
= control target key end

     0   :  { %11 = vsyncpa [#allocation3], 0  ;;  %s1381_s0 = inlined_call_operand.hbm [shape: f32[2,8,64], index: 0, kind: input, shape index: {}]   ;;  %s1382_s1 = inlined_call_operand.hbm [shape: f32[2,8,256], index: 1, kind: input, shape index: {}]   ;;  %s1383_s2 = inlined_call_operand.vmem [shape: f32[2,256], index: 2, kind: input, shape index: {}]   ;;  %s1384_s3 = inlined_call_operand.vmem [shape: f32[2,256], index: 3, kind: input, shape index: {}]   ;;  %s1385_s4 = inlined_call_operand.hbm [shape: f32[64,256], index: 4, kind: input, shape index: {}]   ;;  %s1386_s5 = inlined_call_operand.vmem [shape: f32[1,256], index: 5, kind: input, shape index: {}]   ;;  %s1387_s6 = inlined_call_operand.hbm [shape: f32[2,16,256], index: 6, kind: output, shape index: {}]  }
   0x1   :  { %12 = vsyncpa [#allocation6], 0 }
   0x2   :  { %14 = vsyncpa [#allocation6 + $0x1], 0 }
   0x3   :  { %15 = vsyncpa [#allocation4], 0 }
   0x4   :  { %17 = vsyncpa [#allocation4 + $0x1], 0  ;;  %s1110_s21 = smov 0   ;;  %s1112_s22 = smov 0  }
   0x5   :  { %s1114_s23 = smov 0   ;;  %s1116_s24 = smov 0  }
   0x6 LB: > { %s1131_s25 = sadd.s32 1, %s1062_s24   ;;  %s51_s26 = sadd.s32 1, %s1058_s23  ;;  %s1062_s24 = sphi %s1116_s24, %s1415_s24   ;;  %s1058_s23 = sphi %s1114_s23, %s1414_s23   ;;  %s1054_s22 = sphi %s1112_s22, %s1413_s22   ;;  %s1050_s21 = sphi %s1110_s21, %s1412_s21  }
   0x7   : > { %s48_s27 = ssub.s32 %s1062_s24, %s1131_s25  ;;  %p58_p0 = scmp.ne.s32.totalorder %s1058_s23, %s1054_s22 }
   0x8   : > { %p49_p1 = scmp.eq.s32.totalorder %s48_s27, 0  ;;  %p59_p2 = scmp.eq.s32.totalorder %s1062_s24, 0 }
   0x9   : > { %p853_p5 = scmp.lt.s32.totalorder %s1062_s24, 2  ;;  %s231_s29 = sand.u32 1, %s1062_s24  }
   0xa   : > { %s1140_s28 = scalar_select %p49_p1, %s1058_s23, %s51_s26  }
   0xb   : > { %p60_p3 = por %p59_p2, %p58_p0  ;;  %s233_s30 = sand.u32 1, %s1058_s23  }
   0xc   : > { %s760_s7 = sshll.u32 %s233_s30, 4  ;;  %s761_s8 = sshll.u32 %s1062_s24, 7 }
   0xd   : > { %s1155_s11 = scalar_lea.hbm %s1382_s1, %s761_s8  ;;  %s235_s12 = scalar_lea.vmem [#allocation5], %s760_s7 }
   0xe   : > { %s241_s13 = sshll.u32 %s235_s12, 4  ;;  %p1157_p6 = pnand %p853_p5, %p60_p3  ;;  %s1161_s13 = int_to_ptr.vmem [resolvable:$true] %s241_s13 }
   0xf   : > { %s1163_s15 = sshll.u32 %s233_s30, 6  ;;  %s1165_s16 = scalar_lea.sflag [#allocation6], %s231_s29 }
  0x10   : > { %s904_s17 = scalar_lea.hbm %s1155_s11, 256  ;;  %p906_p8 = pneg %p1157_p6 }
  0x11   : > { %p905_p7 = scmp.ne.s32.totalorder %s1155_s11, %s904_s17  ;;  %s909_s20 = scalar_lea.hbm %s1382_s1, 512 }
  0x12   : > { %p910_p11 = scmp.lt.u32.totalorder %s1155_s11, %s1382_s1  ;;  %p911_p12 = scmp.lt.u32.totalorder %s909_s20, %s904_s17 }
  0x13   : > { %p907_p9 = pnand %p906_p8, %p905_p7  ;;  %p913_p1 = scmp.lt.u32.totalorder %s904_s17, %s1155_s11 }
  0x14   : > { %p912_p13 = por %p911_p12, %p910_p11 }
  0x15   : > { %p908_p10 = pneg %p907_p9 }
  0x16   : > { %p914_p2 = por %p913_p1, %p912_p13 }
  0x18   : > { %p915_p3 = pnand %p914_p2, %p908_p10 }
  0x1a   : > { %918 = shalt.err (!%p915_p3)
}
  0x1b   : > { %s919_s29 = scalar_lea.vmem %s1161_s13, 256  ;;  %s1064_s30 = smov [#allocation5]  }
  0x1c   : > { %p920_p5 = scmp.ne.s32.totalorder %s1161_s13, %s919_s29  ;;  %s924_s7 = sshll.u32 %s1064_s30, 4  ;;  %s925_s7 = int_to_ptr.vmem [resolvable:$false] %s924_s7 }
  0x1d   : > { %s926_s9 = scalar_lea.vmem %s925_s7, 512  ;;  %p927_p4 = scmp.lt.s32.totalorder %s1161_s13, %s925_s7 }
  0x1e   : > { %p922_p7 = pnand %p920_p5, %p906_p8  ;;  %p928_p11 = scmp.lt.s32.totalorder %s926_s9, %s919_s29 }
  0x20   : > { %p923_p9 = pneg %p922_p7  ;;  %p929_p12 = por %p928_p11, %p927_p4 }
  0x22   : > { %p930_p13 = pnand %p929_p12, %p923_p9 }
  0x24   : > { %933 = shalt.err (!%p930_p13)
}
  0x25   : > { %s1388_s10 = smov 256   ;;  %s1389_s12 = smov 128  }
  0x26   : > { %s1067_s17 = smov 8   ;;  %s269_s18 = scalar_lea.vmem [#allocation7], %s1163_s15 }
  0x27   : > { %844 = dma.hbm_to_vmem [thread:$0]  (!%p1157_p6), %s1155_s11, 256, %s1161_s13, %s1165_s16, %s1388_s10, %s1389_s12, %s1067_s17  }
  0x28   : > { %s275_s19 = sshll.u32 %s269_s18, 4  ;;  %s1198_s20 = sadd.s32 4294967295, %s1062_s24   ;;  %s1231_s19 = int_to_ptr.vmem [resolvable:$true] %s275_s19 }
  0x29   : > { %s756_s26 = sadd.s32 4294967294, %s1062_s24   ;;  %p64_p4 = scmp.ne.s32.totalorder %s1054_s22, %s1050_s21 }
  0x2a   : > { %p1391_p10 = scmp.eq.s32.totalorder %s1198_s20, 0  ;;  %p192_p1 = scmp.eq.s32.totalorder %s1198_s20, 1 }
  0x2b   : > { %p198_p2 = scmp.eq.s32.totalorder %s756_s26, 1  ;;  %p757_p5 = scmp.ge.s32.totalorder %s1062_s24, 1 }
  0x2c   : > { %p1207_p3 = por %p1391_p10, %p64_p4  ;;  %p1215_p7 = por %p192_p1, %p58_p0 }
  0x2d   : > { %p1219_p9 = por %p198_p2, %p64_p4  ;;  %p205_p11 = scmp.lt.s32.totalorder %s1062_s24, 3 }
  0x2e   : > { %s1396_s27 = scalar_select %p1207_p3, 1, 0 }
  0x2f   : > { %s1397_s11 = scalar_select %p1215_p7, 1, 0 }
  0x30   : > { %s1398_s13 = scalar_select %p1219_p9, 1, 0 }
  0x31   : > { %s1229_s30 = scalar_lea.hbm %s1385_s4, %s761_s8  ;;  %p1233_p0 = pnand %p757_p5, %p205_p11 }
  0x32   : > { %s1068_s9 = smov [#allocation2]   ;;  %s934_s26 = scalar_lea.hbm %s1229_s30, 1024 }
  0x33   : > { %s1399_s7 = scalar_select %p1233_p0, 1, 0 }
  0x34   : > { %s1237_s18 = sshll.u32 %s1068_s9, 4  ;;  %p935_p13 = scmp.ne.s32.totalorder %s1229_s30, %s934_s26  ;;  %s218_s18 = int_to_ptr.vmem [resolvable:$true] %s1237_s18 }
  0x35   : > { %s939_s29 = scalar_lea.hbm %s1385_s4, 2048  ;;  %p940_p2 = scmp.lt.u32.totalorder %s1229_s30, %s1385_s4 }
  0x36   : > { %p937_p4 = pnand %p935_p13, %p906_p8  ;;  %p941_p5 = scmp.lt.u32.totalorder %s939_s29, %s934_s26 }
  0x37   : > { %p943_p10 = scmp.lt.u32.totalorder %s934_s26, %s1229_s30 }
  0x38   : > { %p938_p1 = pneg %p937_p4  ;;  %p942_p11 = por %p941_p5, %p940_p2 }
  0x3a   : > { %p944_p9 = por %p943_p10, %p942_p11 }
  0x3c   : > { %p945_p7 = pnand %p944_p9, %p938_p1 }
  0x3e   : > { %948 = shalt.err (!%p945_p7)
}
  0x3f   : > { %s949_s9 = scalar_lea.vmem %s1231_s19, 1024  ;;  %s1069_s8 = smov [#allocation7]  }
  0x40   : > { %p950_p13 = scmp.ne.s32.totalorder %s1231_s19, %s949_s9  ;;  %s954_s15 = sshll.u32 %s1069_s8, 4  ;;  %s955_s15 = int_to_ptr.vmem [resolvable:$false] %s954_s15 }
  0x41   : > { %s956_s10 = scalar_lea.vmem %s955_s15, 2048  ;;  %p957_p3 = scmp.lt.s32.totalorder %s1231_s19, %s955_s15 }
  0x42   : > { %p952_p4 = pnand %p950_p13, %p906_p8  ;;  %p958_p2 = scmp.lt.s32.totalorder %s956_s10, %s949_s9 }
  0x44   : > { %p953_p12 = pneg %p952_p4  ;;  %p959_p5 = por %p958_p2, %p957_p3 }
  0x46   : > { %p960_p10 = pnand %p959_p5, %p953_p12 }
  0x48   : > { %963 = shalt.err (!%p960_p10)
}
  0x49   : > { %s1400_s12 = smov 128   ;;  %s1401_s26 = smov 256  }
  0x4a   : > { %847 = dma.hbm_to_vmem [thread:$0]  (!%p1157_p6), %s1229_s30, 1024, %s1231_s19, %s1165_s16, %s1401_s26, %s1400_s12, %s1067_s17  }
  0x4b   : > { %p1402_p8 = scmp.eq.s32.totalorder %s1198_s20, 0  ;;  %p1403_p7 = pneg %p1233_p0 }
  0x4c   : > { %s964_s8 = scalar_lea.hbm %s1381_s0, 256 }
  0x4d   : > { %p1274_p9 = pnand %p1403_p7, %p1402_p8  ;;  %p965_p3 = scmp.ne.s32.totalorder %s1381_s0, %s964_s8 }
  0x4e   : > { %p971_p11 = scmp.lt.u32.totalorder %s964_s8, %s1381_s0 }
  0x4f   : > { %p966_p12 = pneg %p1274_p9 }
  0x51   : > { %p967_p6 = pnand %p966_p12, %p965_p3 }
  0x53   : > { %p968_p1 = pneg %p967_p6 }
  0x55   : > { %p973_p13 = pnand %p971_p11, %p968_p1 }
  0x57   : > { %976 = shalt.err (!%p973_p13)
}
  0x58   : > { %s977_s30 = scalar_lea.vmem %s218_s18, 256  ;;  %p985_p10 = scmp.lt.s32.totalorder %s218_s18, %s218_s18 }
  0x59   : > { %p978_p4 = scmp.ne.s32.totalorder %s218_s18, %s977_s30  ;;  %p986_p8 = scmp.lt.s32.totalorder %s977_s30, %s977_s30 }
  0x5b   : > { %p980_p2 = pnand %p978_p4, %p966_p12  ;;  %p987_p7 = por %p986_p8, %p985_p10 }
  0x5d   : > { %p981_p5 = pneg %p980_p2 }
  0x5f   : > { %p988_p0 = pnand %p987_p7, %p981_p5 }
  0x61   : > { %991 = shalt.err (!%p988_p0)
}
  0x62   : > { %840 = dma.hbm_to_vmem [thread:$0]  (!%p1274_p9), %s1381_s0, 256, %s218_s18, [#allocation3], %s1400_s12, %s1400_s12, %s1067_s17  }
  0x63   : > { %p1405_p3 = scmp.ne.s32.totalorder %s1399_s7, 0 }
  0x64   : > { %p1406_p12 = scmp.eq.s32.totalorder (!%p1405_p3), %s1198_s20, 0 }
  0x65   : > { %293 = sbr.rel (%p1405_p3) target bundleno = 400 (0x190), region = 44 }
  0x6c   : > { %1037 = dma.done.wait (%p1406_p12), [#allocation3], 256   ;;  %p1407_p6 = pmov %p1406_p12 }
  0x6d   : > { %s299_s29 = sand.u32 1, %s1198_s20   ;;  %s1305_s14 = sand.u32 1, %s1054_s22  }
  0x6e   : > { %1039 = vsyncadd (%p1407_p6), [#allocation3], 4294967040  ;;  %s766_s8 = sshll.u32 %s1305_s14, 4  ;;  %s300_s15 = scalar_lea.sflag [#allocation6], %s299_s29 }
  0x6f   : > { %s1308_s10 = scalar_lea.vmem [#allocation5], %s766_s8  ;;  %p1408_p0 = scmp.ne.s32.totalorder %s1396_s27, 0 }
  0x71   : > { %1041 = dma.done.wait (%p1408_p0), %s300_s15, 1280  }
  0x72   : > { %1043 = vsyncadd (%p1408_p0), %s300_s15, 4294966016  ;;  %s767_s17 = sshll.u32 %s1305_s14, 6  ;;  %vm385_vm0 = vcmask 523264   ;;  %v368_v8 = vld [vmem:[#allocation2] sm:$0xff]  ;;  %v369_v13 = vld [vmem:[#allocation2 + $0x8] sm:$0xff]  ;;  %p357_p9 = scmp.lt.s32.totalorder %s1198_s20, 1  ;;  %v494_v22 = vlaneseq }
  0x73   : > { %s312_s7 = scalar_lea.vmem [#allocation7], %s767_s17  ;;  %808 = vmatprep.mubr.msk.f32.mxu0 %vm385_vm0, %v368_v8  ;;  %v1070_v20 = vmov 1966171168   ;;  %v480_v44 = vld [vmem:[%s1308_s10 + $0x8] sm:$0xff]  ;;  %v479_v47 = vld [vmem:[%s1308_s10] sm:$0xff]  ;;  %s768_s17 = sshll.u32 %s1305_s14, 5 }
  0x74   : > { %v370_v0 = vld [vmem:[%s312_s7] sm:$0xff]  ;;  %v371_v1 = vld [vmem:[%s312_s7 + $0x8] sm:$0xff]  ;;  %v372_v2 = vld [vmem:[%s312_s7 + $0x10] sm:$0xff]  ;;  %s358_s27 = scalar_select %p357_p9, %s1198_s20, 1  ;;  %v492_v21 = vunpack.c.l.s4 %v1070_v20  ;;  %v495_v25 = vshrl.u32 %v494_v22, 7 }
  0x75   : > { %v811_v3 = vpack.c.bf16 %v371_v1, %v370_v0  ;;  %v373_v4 = vld [vmem:[%s312_s7 + $0x18] sm:$0xff]  ;;  %v374_v6 = vld [vmem:[%s312_s7 + $0x20] sm:$0xff]  ;;  %v375_v7 = vld [vmem:[%s312_s7 + $0x28] sm:$0xff]  ;;  %s779_s10 = sshll.u32 %s1198_s20, 7  ;;  %s606_s20 = scalar_lea.sflag [#allocation4], %s1305_s14 }
  0x76   : > { %v815_v5 = vpack.c.bf16 %v373_v4, %v372_v2  ;;  %v819_v9 = vpack.c.bf16 %v375_v7, %v374_v6  ;;  %v376_v10 = vld [vmem:[%s312_s7 + $0x30] sm:$0xff]  ;;  %v377_v11 = vld [vmem:[%s312_s7 + $0x38] sm:$0xff]  ;;  %s367_s16 = scalar_lea.vmem %s1386_s5, %s358_s27  ;;  %s769_s19 = sshll.u32 %s358_s27, 1  ;;  %v493_v24 = vunpack.c.0.s8 %v492_v21  ;;  %v539_v38 = vsub.s32 0, %v495_v25 }
  0x77   : > { %812 = vmatprep.subr.bf16.mxu0 %v811_v3  ;;  %v823_v12 = vpack.c.bf16 %v377_v11, %v376_v10  ;;  %v771_v14 = vld [vmem:[%s367_s16] ss:$0 sm:$0xff]  ;;  %s364_s9 = scalar_lea.vmem %s1384_s3, %s769_s19  ;;  %s360_s15 = scalar_lea.vmem %s1383_s2, %s769_s19 }
  0x78   : > { %814 = vmatpush3.bf16.msra.mxu0 %v811_v3  ;;  %v777_v26 = vld.sshfl [vmem:[%s364_s9] sm:$0x11 pattern:$0x75316420]  ;;  %v496_v27 = vsub.s32 %v493_v24, %v495_v25  ;;  %s356_s7 = scalar_lea.vmem [#allocation8], %s768_s17  ;;  %s1335_s16 = scalar_lea.hbm %s1387_s6, %s779_s10 }
  0x79   : > { %816 = vmatprep.subr.bf16.mxu0 %v815_v5  ;;  %v516_v28 = vcombine.high %v777_v26, %v777_v26  ;;  %v776_v29 = vld.sshfl [vmem:[%s360_s15] sm:$0x11 pattern:$0x75316420]  ;;  %s618_s27 = sshll.u32 %s356_s7, 4  ;;  %p1409_p11 = scmp.ne.s32.totalorder %s1397_s11, 0  ;;  %s1337_s27 = int_to_ptr.vmem [resolvable:$true] %s618_s27 }
  0x7a   : > { %v523_v34 = vrot.slane %v777_v26, %v496_v27  ;;  %v490_v35 = vcombine.high %v776_v29, %v776_v29  ;;  %v497_v41 = vrot.slane %v776_v29, %v496_v27  ;;  %s992_s19 = scalar_lea.vmem %s1337_s27, 512  ;;  %s1071_s30 = smov [#allocation8]  }
  0x7b   : > { %v530_v31 = vrot.slane %v516_v28, %v496_v27  ;;  %p993_p1 = scmp.ne.s32.totalorder %s1337_s27, %s992_s19  ;;  %s996_s26 = sshll.u32 %s1071_s30, 4  ;;  %s997_s26 = int_to_ptr.vmem [resolvable:$false] %s996_s26 }
  0x7c   : > { %818 = vmatpush3.bf16.msra.mxu0 %v815_v5  ;;  %v535_v39 = vsub.f32 1.0, %v523_v34  ;;  %v504_v40 = vrot.slane %v490_v35, %v496_v27  ;;  %v540_v45 = vrot.slane %v523_v34, %v539_v38  ;;  %v533_v49 = vsub.f32 1.0, %v497_v41  ;;  %s998_s9 = scalar_lea.vmem %s997_s26, 1024  ;;  %p999_p2 = scmp.lt.s32.totalorder %s1337_s27, %s997_s26 }
  0x7d   : > { %820 = vmatprep.subr.bf16.mxu0 %v819_v9  ;;  %v536_v37 = vsub.f32 1.0, %v530_v31  ;;  %v544_v42 = vrot.slane %v530_v31, %v539_v38  ;;  %v568_v55 = vrot.slane %v497_v41, %v539_v38  ;;  %p994_p13 = pnand %p993_p1, %p1409_p11  ;;  %p1000_p5 = scmp.lt.s32.totalorder %s998_s9, %s992_s19 }
  0x7e   : > { %v554_v46 = vrot.slane %v535_v39, %v539_v38  ;;  %v534_v48 = vsub.f32 1.0, %v504_v40  ;;  %v572_v51 = vrot.slane %v504_v40, %v539_v38  ;;  %v595_v56 = vmul.f32 %v540_v45, %v479_v47 }
  0x7f   : > { %v558_v43 = vrot.slane %v536_v37, %v539_v38  ;;  %v596_v52 = vmul.f32 %v544_v42, %v480_v44  ;;  %v582_v61 = vrot.slane %v533_v49, %v539_v38  ;;  %v575_v3 = vmul.f32 %v568_v55, %v479_v47  ;;  %p995_p4 = pneg %p994_p13  ;;  %p1001_p10 = por %p1000_p5, %p999_p2 }
  0x80   : > { %822 = vmatpush3.bf16.msra.mxu0 %v819_v9  ;;  %v561_v54 = vmul.f32 %v554_v46, %v479_v47  ;;  %v586_v59 = vrot.slane %v534_v48, %v539_v38  ;;  %v576_v1 = vmul.f32 %v572_v51, %v480_v44 }
  0x81   : > { %824 = vmatprep.subr.bf16.mxu0 %v823_v12  ;;  %v562_v50 = vmul.f32 %v558_v43, %v480_v44  ;;  %p1002_p8 = pnand %p1001_p10, %p995_p4 }
  0x84   : > { %826 = vmatpush3.bf16.msra.mxu0 %v823_v12 }
  0x87   : > { %809 = vmatmul.mubr.msk.f32.vlgmr.msra.gmra.mrb[0].mxu0 %vm385_vm0, %v369_v13 }
 0x15a   : > { %v810_v15 = vpop.f32.mrb[0].mxu0 }
 0x15b   : > { %v464_v16 = vadd.f32 %v810_v15, %v771_v14  ;;  %v458_v17 = vpop.f32.mrb[1].mxu0 }
 0x15c   : > { %v459_v18 = vadd.f32 %v771_v14, %v458_v17 }
 0x15d   : > { %v775_v19 = vmul.f32 -1.442695, %v464_v16 }
 0x15e   : > { %v774_v23 = vmul.f32 -1.442695, %v459_v18 }
 0x15f   : > { %896 = vpow2.f32 %v775_v19 }
 0x160   : > { %898 = vpow2.f32 %v774_v23 }
 0x169   : > { %v897_v30 = vpop.eup %896 }
 0x16a   : > { %v899_v32 = vpop.eup %898  ;;  %v474_v33 = vadd.f32 1.0, %v897_v30 }
 0x16b   : > { %v473_v36 = vadd.f32 1.0, %v899_v32 }
 0x16c   : > { %900 = vrcp.f32 %v474_v33 }
 0x16d   : > { %902 = vrcp.f32 %v473_v36 }
 0x176   : > { %v901_v53 = vpop.eup %900 }
 0x177   : > { %v903_v57 = vpop.eup %902  ;;  %v548_v58 = vmul.f32 %v901_v53, %v544_v42  ;;  %v598_v60 = vmul.f32 %v901_v53, %v558_v43 }
 0x178   : > { %v547_v62 = vmul.f32 %v903_v57, %v540_v45  ;;  %v597_v63 = vmul.f32 %v903_v57, %v554_v46 }
 0x179   : > { %v564_v0 = vadd.f32 %v562_v50, %v548_v58  ;;  %v600_v2 = vadd.f32 %v598_v60, %v596_v52 }
 0x17a   : > { %v563_v4 = vadd.f32 %v561_v54, %v547_v62  ;;  %v599_v5 = vadd.f32 %v597_v63, %v595_v56 }
 0x17b   : > { %v590_v6 = vmul.f32 %v586_v59, %v564_v0  ;;  %v602_v7 = vmul.f32 %v600_v2, %v586_v59 }
 0x17c   : > { %v589_v8 = vmul.f32 %v582_v61, %v563_v4  ;;  %v601_v9 = vmul.f32 %v599_v5, %v582_v61 }
 0x17d   : > { %v592_v10 = vadd.f32 %v590_v6, %v576_v1  ;;  %604 = vst [vmem:[%s356_s7 + $0x18] sm:$0xff] %v602_v7 }
 0x17e   : > { %v591_v11 = vadd.f32 %v589_v8, %v575_v3  ;;  %603 = vst [vmem:[%s356_s7 + $0x8] sm:$0xff] %v601_v9 }
 0x17f   : > { %594 = vst [vmem:[%s356_s7 + $0x10] sm:$0xff] %v592_v10 }
 0x180   : > { %593 = vst [vmem:[%s356_s7] sm:$0xff] %v591_v11 }
 0x181   : > { %1005 = shalt.err (!%p1002_p8)
}
 0x182   : > { %s1006_s29 = scalar_lea.hbm %s1335_s16, 512  ;;  %s1010_s17 = scalar_lea.hbm %s1387_s6, 1024 }
 0x183   : > { %p1007_p7 = scmp.ne.s32.totalorder %s1335_s16, %s1006_s29  ;;  %p1011_p6 = scmp.lt.u32.totalorder %s1335_s16, %s1387_s6 }
 0x184   : > { %p1012_p0 = scmp.lt.u32.totalorder %s1010_s17, %s1006_s29  ;;  %p1014_p1 = scmp.lt.u32.totalorder %s1006_s29, %s1335_s16 }
 0x185   : > { %p1008_p3 = pnand %p1007_p7, %p1409_p11 }
 0x186   : > { %p1013_p9 = por %p1012_p0, %p1011_p6 }
 0x187   : > { %p1009_p12 = pneg %p1008_p3 }
 0x188   : > { %p1015_p13 = por %p1014_p1, %p1013_p9 }
 0x18a   : > { %p1016_p4 = pnand %p1015_p13, %p1009_p12 }
 0x18c   : > { %1019 = shalt.err (!%p1016_p4)
}
 0x18d   : > { %s1072_s18 = smov 128   ;;  %s1073_s12 = smov 256  }
 0x18e   : > { %s1074_s19 = smov 8  }
 0x18f   : > { %835 = dma.vmem_to_hbm [thread:$0]  (%p1409_p11), %s1337_s27, 512, %s1335_s16, %s606_s20, %s1072_s18, %s1073_s12, %s1074_s19  }
 0x190 PF: > { %s633_s30 = sand.u32 1, %s1050_s21   ;;  %p1410_p2 = scmp.ne.s32.totalorder %s1398_s13, 0 }
 0x191   : > { %p1411_p5 = scmp.ge.s32.totalorder %s1062_s24, 2  ;;  %s634_s26 = scalar_lea.sflag [#allocation4], %s633_s30 }
 0x193   : > { %p849_p10 = pnand %p1411_p5, %p1410_p2 }
 0x195   : > { %1045 = dma.done.wait (!%p849_p10), %s634_s26, 512  }
 0x196   : > { %1047 = vsyncadd (!%p849_p10), %s634_s26, 4294966784  ;;  %p20_p8 = scmp.ge.s32.totalorder %s1131_s25, 4   ;;  %s1412_s21 = smov %s1054_s22 }
 0x197   : > { %s1413_s22 = smov %s1058_s23  ;;  %s1414_s23 = smov %s1140_s28 }
 0x198   : > { %s1415_s24 = smov %s1131_s25  ;;  %22 = sbr.rel (!%p20_p8) target bundleno = 6 (0x6), region = 114 }
 0x19f   :  { %639 = vsyncpa [#allocation3], 1 }
 0x1a0   :  { %641 = vsyncpa [#allocation3 + $0x1], 1 }
 0x1a1   :  { %642 = vsyncpa [#allocation6], 1 }
 0x1a2   :  { %644 = vsyncpa [#allocation6 + $0x1], 1 }
 0x1a3   :  { %645 = vsyncpa [#allocation4], 1 }
 0x1a4   :  { %647 = vsyncpa [#allocation4 + $0x1], 1 }

</bundles_post_ra>
